<compile_context>
chip_gen: v6e
topology: v6e:2x2x1
jax: 0.10.0
libtpu: 0.0.40
codegen_flags: <defaults>
</compile_context>

<pallas_src>
import functools

import jax
import jax.numpy as jnp
from jax import lax
from jax.experimental import pallas as pl
from jax.experimental.pallas import tpu as pltpu


def _g_embedding_gather_kernel(idx_ref, mean_tbl_ref, logstd_tbl_ref,
                               mean_out_ref, std_out_ref):
    # idx_ref:        (N_padded,) int32  in SMEM (scalar prefetch, full array)
    # mean_tbl_ref:   (V, D) float32     whole table resident in VMEM
    # logstd_tbl_ref: (V, D) float32     whole table resident in VMEM
    # mean_out_ref:   (tile_n, D) float32
    # std_out_ref:    (tile_n, D) float32
    tile_n = mean_out_ref.shape[0]
    base = pl.program_id(0) * tile_n

    # Pure load/store gather loop (exp hoisted below).  8-way unroll exposes
    # ILP: several independent 1-sublane loads/stores per bundle against the
    # 3 vld + 1-2 vst slots instead of one row per loop-carried iteration.
    def gather_row(r, carry):
        row = idx_ref[base + r]                       # cheap SMEM scalar read
        mean_out_ref[pl.ds(r, 1), :] = mean_tbl_ref[pl.ds(row, 1), :]
        std_out_ref[pl.ds(r, 1), :] = logstd_tbl_ref[pl.ds(row, 1), :]
        return carry

    lax.fori_loop(0, tile_n, gather_row, 0, unroll=8)

    # One vectorized EUP pass over the whole (tile_n, D) block instead of
    # tile_n tiny per-row exps inside the serial loop.
    std_out_ref[...] = jnp.exp(std_out_ref[...])


def _vmem_capacity_bytes():
    """Per-core VMEM capacity for the current generation (with safe fallback)."""
    try:
        return int(pltpu.get_tpu_info().vmem_capacity_bytes)
    except Exception:
        # Conservative: v7x has the smallest per-TensorCore VMEM (64 MiB).
        return 64 << 20


@functools.partial(jax.jit, static_argnames=("tile_n",))
def native_g_embedding(idx, emb_mean, emb_logstd, *, tile_n=256):
    """Returns (mean, std) of the Normal distribution, each (B, S, d_model)."""
    B, S = idx.shape
    V, D = emb_mean.shape
    N = B * S

    # nn.Embedding would error on out-of-range indices; here we clamp so a bad
    # index can never turn into an unchecked OOB VMEM read.
    idx_flat = jnp.clip(idx.reshape(N), 0, V - 1).astype(jnp.int32)

    # Pad token count to a multiple of tile_n (padded slots gather row 0 and
    # are sliced away below) — no divisibility requirement on B*S.
    tile_n = int(tile_n)
    n_padded = -(-N // tile_n) * tile_n
    if n_padded != N:
        idx_flat = jnp.pad(idx_flat, (0, n_padded - N))
    num_tiles = n_padded // tile_n

    # VMEM budget: 2 tables (pipeline double-buffers each since the BlockSpec
    # is blocked) + 2 double-buffered output tiles + slack.  Clamp to ~90% of
    # the generation's per-core VMEM (v7x: 64 MiB, v5e/v6e: 128 MiB).
    table_bytes = V * D * 4
    out_tile_bytes = tile_n * D * 4
    vmem_needed = 2 * (2 * table_bytes) + 2 * (2 * out_tile_bytes) + (4 << 20)
    vmem_cap = _vmem_capacity_bytes()
    vmem_limit = int(min(max(vmem_needed, 32 << 20), (vmem_cap * 9) // 10))
    # TODO(synk): if vmem_needed exceeds ~50% of vmem_cap (very large V*D),
    # fall back to an HBM-resident table gather (memory_space=pl.ANY + manual
    # make_async_copy row DMAs with several in flight) instead of whole-table
    # VMEM residency.

    mean_flat, std_flat = pl.pallas_call(
        _g_embedding_gather_kernel,
        out_shape=(
            jax.ShapeDtypeStruct((n_padded, D), jnp.float32),
            jax.ShapeDtypeStruct((n_padded, D), jnp.float32),
        ),
        grid_spec=pltpu.PrefetchScalarGridSpec(
            num_scalar_prefetch=1,                  # idx -> SMEM
            grid=(num_tiles,),
            in_specs=[
                # Constant-index blocks: fetched once per core, then resident.
                pl.BlockSpec((V, D), lambda i, idx: (0, 0)),    # mean table
                pl.BlockSpec((V, D), lambda i, idx: (0, 0)),    # logstd table
            ],
            out_specs=[
                pl.BlockSpec((tile_n, D), lambda i, idx: (i, 0)),
                pl.BlockSpec((tile_n, D), lambda i, idx: (i, 0)),
            ],
        ),
        compiler_params=pltpu.CompilerParams(
            dimension_semantics=("parallel",),      # shards tiles over v7x's 2 TCs
            vmem_limit_bytes=vmem_limit,
        ),
    )(idx_flat, emb_mean, emb_logstd)

    mean = mean_flat[:N].reshape(B, S, D)
    std = std_flat[:N].reshape(B, S, D)
    return mean, std


if __name__ == "__main__":
    vocab_size = 64
    d_model = 32
    B, S = 2, 8

    key = jax.random.PRNGKey(0)
    k_mean, k_logstd, k_idx = jax.random.split(key, 3)

    # Deterministic parameter init (matches nn.Embedding default N(0,1) shape-wise).
    emb_mean = jax.random.normal(k_mean, (vocab_size, d_model), dtype=jnp.float32)
    emb_logstd = jax.random.normal(k_logstd, (vocab_size, d_model),
                                   dtype=jnp.float32) * 0.1

    idx = jax.random.randint(k_idx, (B, S), 0, vocab_size, dtype=jnp.int32)

    # Small tile for the demo so the grid still has >1 (parallel) step;
    # production default is tile_n=256 (sweep 256/512, esp. on v5e).
    mean, std = native_g_embedding(idx, emb_mean, emb_logstd, tile_n=8)
    jax.block_until_ready((mean, std))

    # Reference check in plain JAX.
    ref_mean = emb_mean[idx]
    ref_std = jnp.exp(emb_logstd[idx])
    assert mean.shape == (B, S, d_model) and std.shape == (B, S, d_model)
    assert jnp.allclose(mean, ref_mean, atol=1e-6, rtol=1e-6)
    assert jnp.allclose(std, ref_std, atol=1e-6, rtol=1e-6)

    print("KERNEL_OK")
</pallas_src>

<mosaic_0001>
module attributes {stable_mosaic.version = 11 : i64} {
  func.func @_g_embedding_gather_kernel(%arg0: i32, %arg1: memref<16xi32, #tpu.memory_space<smem>>, %arg2: memref<64x32xf32, #tpu.memory_space<vmem>>, %arg3: memref<64x32xf32, #tpu.memory_space<vmem>>, %arg4: memref<8x32xf32, #tpu.memory_space<vmem>>, %arg5: memref<8x32xf32, #tpu.memory_space<vmem>>) attributes {dimension_semantics = [#tpu.dimension_semantics<parallel>], iteration_bounds = array<i64: 2>, scalar_prefetch = 1 : i64, scratch_operands = 0 : i64, tpu.core_type = #tpu.core_type<tc>, window_params = [{pipeline_mode = #tpu.pipeline_mode<synchronous>, transform_indices = @transform_0, window_bounds = array<i64: 64, 32>}, {pipeline_mode = #tpu.pipeline_mode<synchronous>, transform_indices = @transform_1, window_bounds = array<i64: 64, 32>}, {transform_indices = @transform_2, window_bounds = array<i64: 8, 32>}, {transform_indices = @transform_3, window_bounds = array<i64: 8, 32>}]} {
    %c8_i32 = arith.constant 8 : i32
    %0 = arith.muli %arg0, %c8_i32 : i32
    %c0_i32 = arith.constant 0 : i32
    %1 = arith.addi %0, %c0_i32 : i32
    %2 = arith.index_cast %1 : i32 to index
    %3 = memref.load %arg1[%2] : memref<16xi32, #tpu.memory_space<smem>>
    %4 = arith.index_cast %3 : i32 to index
    %c0 = arith.constant 0 : index
    %5 = vector.load %arg2[%4, %c0] : memref<64x32xf32, #tpu.memory_space<vmem>>, vector<1x32xf32>
    %6 = arith.index_cast %c0_i32 : i32 to index
    %c0_0 = arith.constant 0 : index
    %7 = vector.load %arg4[%6, %c0_0] : memref<8x32xf32, #tpu.memory_space<vmem>>, vector<1x32xf32>
    tpu.vector_store %arg4[%6, %c0_0], %5 {strides = array<i32>} : memref<8x32xf32, #tpu.memory_space<vmem>>, vector<1x32xf32>,
    %8 = arith.index_cast %3 : i32 to index
    %c0_1 = arith.constant 0 : index
    %9 = vector.load %arg3[%8, %c0_1] : memref<64x32xf32, #tpu.memory_space<vmem>>, vector<1x32xf32>
    %10 = arith.index_cast %c0_i32 : i32 to index
    %c0_2 = arith.constant 0 : index
    %11 = vector.load %arg5[%10, %c0_2] : memref<8x32xf32, #tpu.memory_space<vmem>>, vector<1x32xf32>
    tpu.vector_store %arg5[%10, %c0_2], %9 {strides = array<i32>} : memref<8x32xf32, #tpu.memory_space<vmem>>, vector<1x32xf32>,
    %c1_i32 = arith.constant 1 : i32
    %12 = arith.addi %0, %c1_i32 : i32
    %13 = arith.index_cast %12 : i32 to index
    %14 = memref.load %arg1[%13] : memref<16xi32, #tpu.memory_space<smem>>
    %15 = arith.index_cast %14 : i32 to index
    %c0_3 = arith.constant 0 : index
    %16 = vector.load %arg2[%15, %c0_3] : memref<64x32xf32, #tpu.memory_space<vmem>>, vector<1x32xf32>
    %17 = arith.index_cast %c1_i32 : i32 to index
    %c0_4 = arith.constant 0 : index
    %18 = vector.load %arg4[%17, %c0_4] : memref<8x32xf32, #tpu.memory_space<vmem>>, vector<1x32xf32>
    tpu.vector_store %arg4[%17, %c0_4], %16 {strides = array<i32>} : memref<8x32xf32, #tpu.memory_space<vmem>>, vector<1x32xf32>,
    %19 = arith.index_cast %14 : i32 to index
    %c0_5 = arith.constant 0 : index
    %20 = vector.load %arg3[%19, %c0_5] : memref<64x32xf32, #tpu.memory_space<vmem>>, vector<1x32xf32>
    %21 = arith.index_cast %c1_i32 : i32 to index
    %c0_6 = arith.constant 0 : index
    %22 = vector.load %arg5[%21, %c0_6] : memref<8x32xf32, #tpu.memory_space<vmem>>, vector<1x32xf32>
    tpu.vector_store %arg5[%21, %c0_6], %20 {strides = array<i32>} : memref<8x32xf32, #tpu.memory_space<vmem>>, vector<1x32xf32>,
    %c2_i32 = arith.constant 2 : i32
    %23 = arith.addi %0, %c2_i32 : i32
    %24 = arith.index_cast %23 : i32 to index
    %25 = memref.load %arg1[%24] : memref<16xi32, #tpu.memory_space<smem>>
    %26 = arith.index_cast %25 : i32 to index
    %c0_7 = arith.constant 0 : index
    %27 = vector.load %arg2[%26, %c0_7] : memref<64x32xf32, #tpu.memory_space<vmem>>, vector<1x32xf32>
    %28 = arith.index_cast %c2_i32 : i32 to index
    %c0_8 = arith.constant 0 : index
    %29 = vector.load %arg4[%28, %c0_8] : memref<8x32xf32, #tpu.memory_space<vmem>>, vector<1x32xf32>
    tpu.vector_store %arg4[%28, %c0_8], %27 {strides = array<i32>} : memref<8x32xf32, #tpu.memory_space<vmem>>, vector<1x32xf32>,
    %30 = arith.index_cast %25 : i32 to index
    %c0_9 = arith.constant 0 : index
    %31 = vector.load %arg3[%30, %c0_9] : memref<64x32xf32, #tpu.memory_space<vmem>>, vector<1x32xf32>
    %32 = arith.index_cast %c2_i32 : i32 to index
    %c0_10 = arith.constant 0 : index
    %33 = vector.load %arg5[%32, %c0_10] : memref<8x32xf32, #tpu.memory_space<vmem>>, vector<1x32xf32>
    tpu.vector_store %arg5[%32, %c0_10], %31 {strides = array<i32>} : memref<8x32xf32, #tpu.memory_space<vmem>>, vector<1x32xf32>,
    %c3_i32 = arith.constant 3 : i32
    %34 = arith.addi %0, %c3_i32 : i32
    %35 = arith.index_cast %34 : i32 to index
    %36 = memref.load %arg1[%35] : memref<16xi32, #tpu.memory_space<smem>>
    %37 = arith.index_cast %36 : i32 to index
    %c0_11 = arith.constant 0 : index
    %38 = vector.load %arg2[%37, %c0_11] : memref<64x32xf32, #tpu.memory_space<vmem>>, vector<1x32xf32>
    %39 = arith.index_cast %c3_i32 : i32 to index
    %c0_12 = arith.constant 0 : index
    %40 = vector.load %arg4[%39, %c0_12] : memref<8x32xf32, #tpu.memory_space<vmem>>, vector<1x32xf32>
    tpu.vector_store %arg4[%39, %c0_12], %38 {strides = array<i32>} : memref<8x32xf32, #tpu.memory_space<vmem>>, vector<1x32xf32>,
    %41 = arith.index_cast %36 : i32 to index
    %c0_13 = arith.constant 0 : index
    %42 = vector.load %arg3[%41, %c0_13] : memref<64x32xf32, #tpu.memory_space<vmem>>, vector<1x32xf32>
    %43 = arith.index_cast %c3_i32 : i32 to index
    %c0_14 = arith.constant 0 : index
    %44 = vector.load %arg5[%43, %c0_14] : memref<8x32xf32, #tpu.memory_space<vmem>>, vector<1x32xf32>
    tpu.vector_store %arg5[%43, %c0_14], %42 {strides = array<i32>} : memref<8x32xf32, #tpu.memory_space<vmem>>, vector<1x32xf32>,
    %c4_i32 = arith.constant 4 : i32
    %45 = arith.addi %0, %c4_i32 : i32
    %46 = arith.index_cast %45 : i32 to index
    %47 = memref.load %arg1[%46] : memref<16xi32, #tpu.memory_space<smem>>
    %48 = arith.index_cast %47 : i32 to index
    %c0_15 = arith.constant 0 : index
    %49 = vector.load %arg2[%48, %c0_15] : memref<64x32xf32, #tpu.memory_space<vmem>>, vector<1x32xf32>
    %50 = arith.index_cast %c4_i32 : i32 to index
    %c0_16 = arith.constant 0 : index
    %51 = vector.load %arg4[%50, %c0_16] : memref<8x32xf32, #tpu.memory_space<vmem>>, vector<1x32xf32>
    tpu.vector_store %arg4[%50, %c0_16], %49 {strides = array<i32>} : memref<8x32xf32, #tpu.memory_space<vmem>>, vector<1x32xf32>,
    %52 = arith.index_cast %47 : i32 to index
    %c0_17 = arith.constant 0 : index
    %53 = vector.load %arg3[%52, %c0_17] : memref<64x32xf32, #tpu.memory_space<vmem>>, vector<1x32xf32>
    %54 = arith.index_cast %c4_i32 : i32 to index
    %c0_18 = arith.constant 0 : index
    %55 = vector.load %arg5[%54, %c0_18] : memref<8x32xf32, #tpu.memory_space<vmem>>, vector<1x32xf32>
    tpu.vector_store %arg5[%54, %c0_18], %53 {strides = array<i32>} : memref<8x32xf32, #tpu.memory_space<vmem>>, vector<1x32xf32>,
    %c5_i32 = arith.constant 5 : i32
    %56 = arith.addi %0, %c5_i32 : i32
    %57 = arith.index_cast %56 : i32 to index
    %58 = memref.load %arg1[%57] : memref<16xi32, #tpu.memory_space<smem>>
    %59 = arith.index_cast %58 : i32 to index
    %c0_19 = arith.constant 0 : index
    %60 = vector.load %arg2[%59, %c0_19] : memref<64x32xf32, #tpu.memory_space<vmem>>, vector<1x32xf32>
    %61 = arith.index_cast %c5_i32 : i32 to index
    %c0_20 = arith.constant 0 : index
    %62 = vector.load %arg4[%61, %c0_20] : memref<8x32xf32, #tpu.memory_space<vmem>>, vector<1x32xf32>
    tpu.vector_store %arg4[%61, %c0_20], %60 {strides = array<i32>} : memref<8x32xf32, #tpu.memory_space<vmem>>, vector<1x32xf32>,
    %63 = arith.index_cast %58 : i32 to index
    %c0_21 = arith.constant 0 : index
    %64 = vector.load %arg3[%63, %c0_21] : memref<64x32xf32, #tpu.memory_space<vmem>>, vector<1x32xf32>
    %65 = arith.index_cast %c5_i32 : i32 to index
    %c0_22 = arith.constant 0 : index
    %66 = vector.load %arg5[%65, %c0_22] : memref<8x32xf32, #tpu.memory_space<vmem>>, vector<1x32xf32>
    tpu.vector_store %arg5[%65, %c0_22], %64 {strides = array<i32>} : memref<8x32xf32, #tpu.memory_space<vmem>>, vector<1x32xf32>,
    %c6_i32 = arith.constant 6 : i32
    %67 = arith.addi %0, %c6_i32 : i32
    %68 = arith.index_cast %67 : i32 to index
    %69 = memref.load %arg1[%68] : memref<16xi32, #tpu.memory_space<smem>>
    %70 = arith.index_cast %69 : i32 to index
    %c0_23 = arith.constant 0 : index
    %71 = vector.load %arg2[%70, %c0_23] : memref<64x32xf32, #tpu.memory_space<vmem>>, vector<1x32xf32>
    %72 = arith.index_cast %c6_i32 : i32 to index
    %c0_24 = arith.constant 0 : index
    %73 = vector.load %arg4[%72, %c0_24] : memref<8x32xf32, #tpu.memory_space<vmem>>, vector<1x32xf32>
    tpu.vector_store %arg4[%72, %c0_24], %71 {strides = array<i32>} : memref<8x32xf32, #tpu.memory_space<vmem>>, vector<1x32xf32>,
    %74 = arith.index_cast %69 : i32 to index
    %c0_25 = arith.constant 0 : index
    %75 = vector.load %arg3[%74, %c0_25] : memref<64x32xf32, #tpu.memory_space<vmem>>, vector<1x32xf32>
    %76 = arith.index_cast %c6_i32 : i32 to index
    %c0_26 = arith.constant 0 : index
    %77 = vector.load %arg5[%76, %c0_26] : memref<8x32xf32, #tpu.memory_space<vmem>>, vector<1x32xf32>
    tpu.vector_store %arg5[%76, %c0_26], %75 {strides = array<i32>} : memref<8x32xf32, #tpu.memory_space<vmem>>, vector<1x32xf32>,
    %c7_i32 = arith.constant 7 : i32
    %78 = arith.addi %0, %c7_i32 : i32
    %79 = arith.index_cast %78 : i32 to index
    %80 = memref.load %arg1[%79] : memref<16xi32, #tpu.memory_space<smem>>
    %81 = arith.index_cast %80 : i32 to index
    %c0_27 = arith.constant 0 : index
    %82 = vector.load %arg2[%81, %c0_27] : memref<64x32xf32, #tpu.memory_space<vmem>>, vector<1x32xf32>
    %83 = arith.index_cast %c7_i32 : i32 to index
    %c0_28 = arith.constant 0 : index
    %84 = vector.load %arg4[%83, %c0_28] : memref<8x32xf32, #tpu.memory_space<vmem>>, vector<1x32xf32>
    tpu.vector_store %arg4[%83, %c0_28], %82 {strides = array<i32>} : memref<8x32xf32, #tpu.memory_space<vmem>>, vector<1x32xf32>,
    %85 = arith.index_cast %80 : i32 to index
    %c0_29 = arith.constant 0 : index
    %86 = vector.load %arg3[%85, %c0_29] : memref<64x32xf32, #tpu.memory_space<vmem>>, vector<1x32xf32>
    %87 = arith.index_cast %c7_i32 : i32 to index
    %c0_30 = arith.constant 0 : index
    %88 = vector.load %arg5[%87, %c0_30] : memref<8x32xf32, #tpu.memory_space<vmem>>, vector<1x32xf32>
    tpu.vector_store %arg5[%87, %c0_30], %86 {strides = array<i32>} : memref<8x32xf32, #tpu.memory_space<vmem>>, vector<1x32xf32>,
    %c8_i32_31 = arith.constant 8 : i32
    %c0_32 = arith.constant 0 : index
    %c0_33 = arith.constant 0 : index
    %89 = vector.load %arg5[%c0_32, %c0_33] : memref<8x32xf32, #tpu.memory_space<vmem>>, vector<8x32xf32>
    %90 = math.exp %89 : vector<8x32xf32>
    %c0_34 = arith.constant 0 : index
    %c0_35 = arith.constant 0 : index
    %91 = vector.load %arg5[%c0_34, %c0_35] : memref<8x32xf32, #tpu.memory_space<vmem>>, vector<8x32xf32>
    tpu.vector_store %arg5[%c0_34, %c0_35], %90 {strides = array<i32>} : memref<8x32xf32, #tpu.memory_space<vmem>>, vector<8x32xf32>,
    return
  }
  func.func @transform_0(%arg0: i32, %arg1: memref<16xi32, #tpu.memory_space<smem>>) -> (i32, i32) {
    %c0_i32 = arith.constant 0 : i32
    %c0_i32_0 = arith.constant 0 : i32
    %c0_i32_1 = arith.constant 0 : i32
    return %c0_i32, %c0_i32_0 : i32, i32
  }
  func.func @transform_1(%arg0: i32, %arg1: memref<16xi32, #tpu.memory_space<smem>>) -> (i32, i32) {
    %c0_i32 = arith.constant 0 : i32
    %c0_i32_0 = arith.constant 0 : i32
    %c0_i32_1 = arith.constant 0 : i32
    return %c0_i32, %c0_i32_0 : i32, i32
  }
  func.func @transform_2(%arg0: i32, %arg1: memref<16xi32, #tpu.memory_space<smem>>) -> (i32, i32) {
    %c0_i32 = arith.constant 0 : i32
    %c0_i32_0 = arith.constant 0 : i32
    return %arg0, %c0_i32 : i32, i32
  }
  func.func @transform_3(%arg0: i32, %arg1: memref<16xi32, #tpu.memory_space<smem>>) -> (i32, i32) {
    %c0_i32 = arith.constant 0 : i32
    %c0_i32_0 = arith.constant 0 : i32
    return %arg0, %c0_i32 : i32, i32
  }
}

</mosaic_0001>

<bundles_post_ra>
// kernel: native_g_embedding.1
= control target key start
LH: loop header
LB: loop body
LE: loop exit
PB: predicated region body
PF: predicated region fallthrough
CT: control target
= control target key end

     0   :  { %s797_s0 = inlined_call_operand.vmem [shape: s32[16], index: 0, kind: input, shape index: {}]   ;;  %s798_s1 = inlined_call_operand.vmem [shape: f32[64,32], index: 1, kind: input, shape index: {}]   ;;  %s799_s2 = inlined_call_operand.vmem [shape: f32[64,32], index: 2, kind: input, shape index: {}]   ;;  %s800_s3 = inlined_call_operand.hbm [shape: f32[16,32], index: 3, kind: output, shape index: {0}]   ;;  %s801_s4 = inlined_call_operand.hbm [shape: f32[16,32], index: 4, kind: output, shape index: {1}]  }
   0x1   :  { %s10_s17 = sshll.u32 %s797_s0, 4  ;;  %s11_s17 = int_to_ptr.vmem [resolvable:$true] %s10_s17 }
   0x2   :  { %s423_s18 = scalar_lea.vmem %s11_s17, 16  ;;  %p428_p1 = scmp.lt.s32.totalorder %s11_s17, %s11_s17 }
   0x3   :  { %p424_p0 = scmp.ne.s32.totalorder %s11_s17, %s423_s18  ;;  %p429_p2 = scmp.lt.s32.totalorder %s423_s18, %s423_s18 }
   0x5   :  { %p430_p3 = por %p429_p2, %p428_p1 }
   0x7   :  { %p431_p4 = pnand %p430_p3, %p424_p0 }
   0x9   :  { %434 = shalt.err (!%p431_p4)  }
   0xa   :  { %s529_s19 = smov [#allocation3]  }
   0xb   :  { %13 = dma.vmem_to_smem %s11_s17, 16, %s529_s19, [#allocation2] }
   0xc   :  { %503 = dma.done.wait [#allocation2], 16 }
   0xd   :  { %504 = vsyncadd [#allocation2], 4294967280 }
   0xe   :  { %15 = sfence }
   0xf   :  { %16 = vsyncpa [#allocation5], 0 }
  0x10   :  { %18 = vsyncpa [#allocation5 + $0x1], 0 }
  0x11   :  { %19 = vsyncpa [#allocation7], 0 }
  0x12   :  { %21 = vsyncpa [#allocation7 + $0x1], 0  ;;  %s560_s20 = smov 0   ;;  %s562_s0 = smov 0  }
  0x13   :  { %s564_s21 = smov 0   ;;  %s566_s22 = smov 0  }
  0x14 LB: > { %805 = sst [smem:[#allocation11_spill]] %s519_s0  ;;  %s581_s23 = sadd.s32 4294967295, %s527_s22   ;;  %s527_s22 = sphi %s566_s22, %s814_s22   ;;  %s523_s21 = sphi %s564_s21, %s813_s21   ;;  %s519_s0 = sphi %s562_s0, %s812_s0   ;;  %s515_s20 = sphi %s560_s20, %s811_s20  }
  0x15   : > { %806 = sst [smem:[#allocation12_spill]] %s523_s21  ;;  %s364_s24 = sadd.s32 4294967294, %s527_s22  }
  0x16   : > { %s585_s25 = sadd.s32 1, %s527_s22   ;;  %s76_s26 = sadd.s32 1, %s523_s21 }
  0x17   : > { %s73_s27 = ssub.s32 %s527_s22, %s585_s25  ;;  %p86_p5 = scmp.ne.s32.totalorder %s523_s21, %s519_s0 }
  0x18   : > { %p74_p6 = scmp.eq.s32.totalorder %s73_s27, 0  ;;  %p87_p7 = scmp.eq.s32.totalorder %s581_s23, 1 }
  0x19   : > { %p92_p8 = scmp.ne.s32.totalorder %s519_s0, %s515_s20  ;;  %p93_p9 = scmp.eq.s32.totalorder %s364_s24, 1 }
  0x1a   : > { %s596_s28 = scalar_select %p74_p6, %s523_s21, %s76_s26  }
  0x1b   : > { %p598_p10 = por %p87_p7, %p86_p5  ;;  %p602_p11 = por %p93_p9, %p92_p8 }
  0x1c   : > { %807 = sst [smem:[#allocation13_spill]] %s596_s28  ;;  %p366_p12 = scmp.ge.s32.totalorder %s527_s22, 1 }
  0x1d   : > { %p143_p13 = scmp.lt.s32.totalorder %s527_s22, 3 }
  0x1f   : > { %p144_p0 = pnand %p366_p12, %p143_p13 }
  0x20   : > { %s609_s5 = sand.u32 (!%p144_p0), 1, %s519_s0   ;;  %s369_s6 = sshll.u32 (!%p144_p0), %s581_s23, 3 }
  0x21   : > { %147 = sbr.rel (%p144_p0) target bundleno = 103 (0x67), region = 28  ;;  %s802_s7 = sshll.u32 (!%p144_p0), %s609_s5, 3 }
  0x22   : > { %s613_s8 = sld [smem:[#allocation3 + %s369_s6]] (!%p144_p0)  ;;  %s176_s9 = sadd.s32 (!%p144_p0), 1, %s369_s6 }
  0x23   : > { %s615_s10 = sld [smem:[#allocation3 + %s176_s9]] (!%p144_p0)  ;;  %s184_s11 = sadd.s32 (!%p144_p0), 2, %s369_s6 }
  0x24   : > { %s617_s12 = sld [smem:[#allocation3 + %s184_s11]] (!%p144_p0)  ;;  %s192_s13 = sadd.s32 (!%p144_p0), 3, %s369_s6 }
  0x25   : > { %s619_s14 = sld [smem:[#allocation3 + %s192_s13]] (!%p144_p0)  ;;  %s200_s15 = sadd.s32 (!%p144_p0), 4, %s369_s6 }
  0x26   : > { %vm171_vm0 = vcmask 253952   ;;  %s621_s16 = sld [smem:[#allocation3 + %s200_s15]]  ;;  %s208_s17 = sadd.s32 5, %s369_s6 }
  0x27   : > { %s627_s26 = sld [smem:[#allocation3 + %s208_s17]]  ;;  %s216_s27 = sadd.s32 6, %s369_s6 }
  0x28   : > { %s173_s24 = scalar_lea.vmem %s799_s2, %s613_s8  ;;  %s224_s9 = sadd.s32 7, %s369_s6 }
  0x29   : > { %v174_v0 = vld [vmem:[%s173_s24] sm:$0x1]  ;;  %s631_s11 = scalar_lea.vmem [#allocation6], %s802_s7  ;;  %s181_s17 = scalar_lea.vmem %s799_s2, %s615_s10 }
  0x2a   : > { %175 = vst.msk [vmem:[%s631_s11] sm:$0x1] %vm171_vm0, %v174_v0  ;;  %s639_s18 = sld [smem:[#allocation3 + %s216_s27]]  ;;  %v182_v1 = vld [vmem:[%s181_s17] sm:$0x1]  ;;  %s189_s24 = scalar_lea.vmem %s799_s2, %s617_s12 }
  0x2b   : > { %s645_s7 = sld [smem:[#allocation3 + %s224_s9]]  ;;  %183 = vst.msk [vmem:[%s631_s11 + $0x1] sm:$0x1] %vm171_vm0, %v182_v1  ;;  %v190_v2 = vld [vmem:[%s189_s24] sm:$0x1]  ;;  %s197_s13 = scalar_lea.vmem %s799_s2, %s619_s14 }
  0x2c   : > { %191 = vst.msk [vmem:[%s631_s11 + $0x2] sm:$0x1] %vm171_vm0, %v190_v2  ;;  %v198_v3 = vld [vmem:[%s197_s13] sm:$0x1]  ;;  %s205_s17 = scalar_lea.vmem %s799_s2, %s621_s16  ;;  %s169_s19 = scalar_lea.vmem %s798_s1, %s613_s8 }
  0x2d   : > { %199 = vst.msk [vmem:[%s631_s11 + $0x3] sm:$0x1] %vm171_vm0, %v198_v3  ;;  %v206_v4 = vld [vmem:[%s205_s17] sm:$0x1]  ;;  %s213_s24 = scalar_lea.vmem %s799_s2, %s627_s26  ;;  %s178_s27 = scalar_lea.vmem %s798_s1, %s615_s10 }
  0x2e   : > { %v170_v5 = vld [vmem:[%s169_s19] sm:$0x1]  ;;  %207 = vst.msk [vmem:[%s631_s11 + $0x4] sm:$0x1] %vm171_vm0, %v206_v4  ;;  %s810_s15 = sshll.u32 %s609_s5, 3  ;;  %s186_s0 = scalar_lea.vmem %s798_s1, %s617_s12 }
  0x2f   : > { %v214_v6 = vld [vmem:[%s213_s24] sm:$0x1]  ;;  %s677_s9 = scalar_lea.vmem [#allocation4], %s810_s15  ;;  %s194_s19 = scalar_lea.vmem %s798_s1, %s619_s14 }
  0x30   : > { %172 = vst.msk [vmem:[%s677_s9] sm:$0x1] %vm171_vm0, %v170_v5  ;;  %v179_v7 = vld [vmem:[%s178_s27] sm:$0x1]  ;;  %215 = vst.msk [vmem:[%s631_s11 + $0x5] sm:$0x1] %vm171_vm0, %v214_v6  ;;  %s221_s24 = scalar_lea.vmem %s799_s2, %s639_s18  ;;  %s202_s27 = scalar_lea.vmem %s798_s1, %s621_s16 }
  0x31   : > { %180 = vst.msk [vmem:[%s677_s9 + $0x1] sm:$0x1] %vm171_vm0, %v179_v7  ;;  %v187_v8 = vld [vmem:[%s186_s0] sm:$0x1]  ;;  %s229_s8 = scalar_lea.vmem %s799_s2, %s645_s7  ;;  %s210_s10 = scalar_lea.vmem %s798_s1, %s627_s26 }
  0x32   : > { %v195_v9 = vld [vmem:[%s194_s19] sm:$0x1]  ;;  %188 = vst.msk [vmem:[%s677_s9 + $0x2] sm:$0x1] %vm171_vm0, %v187_v8  ;;  %s218_s19 = scalar_lea.vmem %s798_s1, %s639_s18  ;;  %s372_s26 = sshll.u32 %s581_s23, 7 }
  0x33   : > { %v222_v10 = vld [vmem:[%s221_s24] sm:$0x1]  ;;  %196 = vst.msk [vmem:[%s677_s9 + $0x3] sm:$0x1] %vm171_vm0, %v195_v9  ;;  %s226_s24 = scalar_lea.vmem %s798_s1, %s645_s7  ;;  %s254_s18 = scalar_lea.hbm %s800_s3, %s372_s26 }
  0x34   : > { %v203_v11 = vld [vmem:[%s202_s27] sm:$0x1]  ;;  %223 = vst.msk [vmem:[%s631_s11 + $0x6] sm:$0x1] %vm171_vm0, %v222_v10  ;;  %s256_s27 = sshll.u32 %s677_s9, 4  ;;  %s238_s14 = scalar_lea.sflag [#allocation5], %s609_s5  ;;  %s257_s27 = int_to_ptr.vmem [resolvable:$true] %s256_s27 }
  0x35   : > { %v230_v12 = vld [vmem:[%s229_s8] sm:$0x1]  ;;  %204 = vst.msk [vmem:[%s677_s9 + $0x4] sm:$0x1] %vm171_vm0, %v203_v11  ;;  %s435_s7 = scalar_lea.vmem %s257_s27, 128  ;;  %s530_s15 = smov [#allocation4]  }
  0x36   : > { %v211_v13 = vld [vmem:[%s210_s10] sm:$0x1]  ;;  %231 = vst.msk [vmem:[%s631_s11 + $0x7] sm:$0x1] %vm171_vm0, %v230_v12  ;;  %p436_p1 = scmp.ne.s32.totalorder %s257_s27, %s435_s7  ;;  %s439_s8 = sshll.u32 %s530_s15, 4  ;;  %s440_s8 = int_to_ptr.vmem [resolvable:$false] %s439_s8 }
  0x37   : > { %212 = vst.msk [vmem:[%s677_s9 + $0x5] sm:$0x1] %vm171_vm0, %v211_v13  ;;  %v219_v14 = vld [vmem:[%s218_s19] sm:$0x1]  ;;  %s441_s17 = scalar_lea.vmem %s440_s8, 256  ;;  %p442_p4 = scmp.lt.s32.totalorder %s257_s27, %s440_s8 }
  0x38   : > { %v227_v15 = vld [vmem:[%s226_s24] sm:$0x1]  ;;  %220 = vst.msk [vmem:[%s677_s9 + $0x6] sm:$0x1] %vm171_vm0, %v219_v14  ;;  %p437_p2 = pnand %p436_p1, %p598_p10  ;;  %p443_p5 = scmp.lt.s32.totalorder %s441_s17, %s435_s7 }
  0x39   : > { %228 = vst.msk [vmem:[%s677_s9 + $0x7] sm:$0x1] %vm171_vm0, %v227_v15 }
  0x3a   : > { %p438_p3 = pneg %p437_p2  ;;  %p444_p6 = por %p443_p5, %p442_p4 }
  0x3c   : > { %p445_p7 = pnand %p444_p6, %p438_p3 }
  0x3e   : > { %448 = shalt.err (!%p445_p7)
}
  0x3f   : > { %s449_s0 = scalar_lea.hbm %s254_s18, 128  ;;  %s453_s16 = scalar_lea.hbm %s800_s3, 256 }
  0x40   : > { %p450_p8 = scmp.ne.s32.totalorder %s254_s18, %s449_s0  ;;  %p454_p13 = scmp.lt.s32.totalorder %s254_s18, %s800_s3 }
  0x41   : > { %p455_p0 = scmp.lt.s32.totalorder %s453_s16, %s449_s0 }
  0x42   : > { %p451_p9 = pnand %p450_p8, %p598_p10 }
  0x43   : > { %p456_p1 = por %p455_p0, %p454_p13 }
  0x44   : > { %p452_p12 = pneg %p451_p9 }
  0x46   : > { %p457_p2 = pnand %p456_p1, %p452_p12 }
  0x48   : > { %460 = shalt.err (!%p457_p2)
}
  0x49   : > { %376 = dma.vmem_to_hbm [thread:$0]  (%p598_p10), %s257_s27, 128, %s254_s18, %s238_s14   ;;  %v232_v16 = vld [vmem:[%s631_s11] sm:$0xff]  ;;  %vm235_vm1 = vcmask 261120  }
  0x4a   : > { %v233_v17 = vmul.f32 1.442695, %v232_v16  ;;  %s269_s21 = sshll.u32 %s631_s11, 4  ;;  %s760_s12 = scalar_lea.hbm %s801_s4, %s372_s26  ;;  %s270_s21 = int_to_ptr.vmem [resolvable:$true] %s269_s21 }
  0x4b   : > { %s243_s13 = scalar_lea.sflag [#allocation7], %s609_s5  ;;  %s461_s7 = scalar_lea.vmem %s270_s21, 128 }
  0x4c   : > { %421 = vpow2.f32 %v233_v17  ;;  %p462_p3 = scmp.ne.s32.totalorder %s270_s21, %s461_s7  ;;  %s531_s18 = smov [#allocation6]  }
  0x4d   : > { %s465_s27 = sshll.u32 %s531_s18, 4  ;;  %s466_s27 = int_to_ptr.vmem [resolvable:$false] %s465_s27 }
  0x4e   : > { %p463_p4 = pnand %p462_p3, %p598_p10  ;;  %s467_s14 = scalar_lea.vmem %s466_s27, 256 }
  0x4f   : > { %p468_p6 = scmp.lt.s32.totalorder %s270_s21, %s466_s27  ;;  %p469_p7 = scmp.lt.s32.totalorder %s467_s14, %s461_s7 }
  0x50   : > { %p464_p5 = pneg %p463_p4 }
  0x51   : > { %p470_p8 = por %p469_p7, %p468_p6 }
  0x53   : > { %p471_p9 = pnand %p470_p8, %p464_p5 }
  0x59   : > { %v422_v18 = vpop.eup %421 }
  0x5a   : > { %236 = vst.msk [vmem:[%s631_s11] sm:$0xff] %vm235_vm1, %v422_v18 }
  0x5b   : > { %474 = shalt.err (!%p471_p9)
}
  0x5c   : > { %s475_s23 = scalar_lea.hbm %s760_s12, 128  ;;  %s479_s26 = scalar_lea.hbm %s801_s4, 256 }
  0x5d   : > { %p476_p12 = scmp.ne.s32.totalorder %s760_s12, %s475_s23  ;;  %p480_p1 = scmp.lt.s32.totalorder %s760_s12, %s801_s4 }
  0x5e   : > { %p481_p2 = scmp.lt.s32.totalorder %s479_s26, %s475_s23 }
  0x5f   : > { %p477_p13 = pnand %p476_p12, %p598_p10 }
  0x60   : > { %p482_p3 = por %p481_p2, %p480_p1 }
  0x61   : > { %p478_p0 = pneg %p477_p13 }
  0x63   : > { %p483_p4 = pnand %p482_p3, %p478_p0 }
  0x65   : > { %486 = shalt.err (!%p483_p4)
}
  0x66   : > { %377 = dma.vmem_to_hbm [thread:$0]  (%p598_p10), %s270_s21, 128, %s760_s12, %s243_s13  }
  0x67 PF: > { %p387_p5 = scmp.ge.s32.totalorder %s527_s22, 2  ;;  %s281_s17 = sand.u32 1, %s515_s20  }
  0x68   : > { %s282_s0 = scalar_lea.sflag [#allocation5], %s281_s17 }
  0x69   : > { %p381_p6 = pnand %p387_p5, %p602_p11 }
  0x6b   : > { %p382_p7 = pneg %p381_p6 }
  0x6d   : > { %506 = dma.done.wait (%p382_p7), %s282_s0, 128  }
  0x6e   : > { %508 = vsyncadd (%p382_p7), %s282_s0, 4294967168  ;;  %s291_s9 = scalar_lea.sflag [#allocation7], %s281_s17 }
  0x6f   : > { %510 = dma.done.wait (%p382_p7), %s291_s9, 128  }
  0x70   : > { %512 = vsyncadd (%p382_p7), %s291_s9, 4294967168  ;;  %s811_s20 = sld [smem:[#allocation11_spill]]  ;;  %p24_p10 = scmp.ge.s32.totalorder %s585_s25, 4  }
  0x71   : > { %s812_s0 = sld [smem:[#allocation12_spill]]  ;;  %s814_s22 = smov %s585_s25 }
  0x72   : > { %s813_s21 = sld [smem:[#allocation13_spill]]  ;;  %26 = sbr.rel (!%p24_p10) target bundleno = 20 (0x14), region = 93 }
  0x77   :  { %296 = vsyncpa [#allocation5], 1 }
  0x78   :  { %298 = vsyncpa [#allocation5 + $0x1], 1 }
  0x79   :  { %299 = vsyncpa [#allocation7], 1 }
  0x7a   :  { %301 = vsyncpa [#allocation7 + $0x1], 1 }

</bundles_post_ra>
